<compile_context>
chip_gen: v6e
topology: v6e:2x2x1
jax: 0.10.0
libtpu: 0.0.40
codegen_flags: <defaults>
</compile_context>

<pallas_src>
import functools
import math

import jax
import jax.numpy as jnp
from jax.experimental import pallas as pl
from jax.experimental.pallas import tpu as pltpu

_NEG_INF = -0.7 * float(jnp.finfo(jnp.float32).max)


def _round_up(x, m):
    return ((x + m - 1) // m) * m


# ----------------------------------------------------------------------------
# 1. Tiled matmul kernel (wq / wk / wv / wo linear projections, no bias).
# ----------------------------------------------------------------------------
def _matmul_kernel(a_ref, b_ref, o_ref, acc_ref):
    @pl.when(pl.program_id(2) == 0)
    def _():
        acc_ref[...] = jnp.zeros(acc_ref.shape, acc_ref.dtype)

    acc_ref[...] += jnp.dot(a_ref[...], b_ref[...],
                            preferred_element_type=jnp.float32)

    @pl.when(pl.program_id(2) == pl.num_programs(2) - 1)
    def _():
        o_ref[...] = acc_ref[...].astype(o_ref.dtype)


def matmul(a, b, *, tm=256, tn=256, tk=512, out_dtype=None):
    """a @ b with a:(M,K), b:(K,N). Pads to tile multiples when needed."""
    M, K = a.shape
    K2, N = b.shape
    assert K == K2
    out_dtype = out_dtype or a.dtype
    # Full-extent blocks for small dims (always legal); otherwise lane/sublane
    # aligned tiles. ~2.8 MiB of double-buffered VMEM at the default caps.
    tm = M if M < tm else tm
    tn = N if N < tn else tn
    tk = K if K < tk else tk
    Mp, Np, Kp = _round_up(M, tm), _round_up(N, tn), _round_up(K, tk)
    if (Mp, Kp) != (M, K):
        a = jnp.pad(a, ((0, Mp - M), (0, Kp - K)))
    if (Kp, Np) != (K, N):
        b = jnp.pad(b, ((0, Kp - K), (0, Np - N)))

    out = pl.pallas_call(
        _matmul_kernel,
        out_shape=jax.ShapeDtypeStruct((Mp, Np), out_dtype),
        grid_spec=pltpu.PrefetchScalarGridSpec(
            num_scalar_prefetch=0,
            grid=(Mp // tm, Np // tn, Kp // tk),
            in_specs=[
                pl.BlockSpec((tm, tk), lambda i, j, k: (i, k)),
                pl.BlockSpec((tk, tn), lambda i, j, k: (k, j)),
            ],
            out_specs=pl.BlockSpec((tm, tn), lambda i, j, k: (i, j)),
            scratch_shapes=[pltpu.VMEM((tm, tn), jnp.float32)],
        ),
        compiler_params=pltpu.CompilerParams(
            dimension_semantics=("parallel", "parallel", "arbitrary")),
    )(a, b)
    if (Mp, Np) != (M, N):
        out = out[:M, :N]
    return out


# ----------------------------------------------------------------------------
# 2. Rotary embedding kernel. Works on de-interleaved (even, odd) halves so the
#    kernel body is pure elementwise math; the interleave is done in the wrapper.
# ----------------------------------------------------------------------------
def _rope_kernel(xr_ref, xi_ref, cos_ref, sin_ref, or_ref, oi_ref):
    xr = xr_ref[0].astype(jnp.float32)   # (S, D//2)  "real" parts (even lanes)
    xi = xi_ref[0].astype(jnp.float32)   # (S, D//2)  "imag" parts (odd lanes)
    c = cos_ref[...]
    s = sin_ref[...]
    or_ref[0] = (xr * c - xi * s).astype(or_ref.dtype)
    oi_ref[0] = (xr * s + xi * c).astype(oi_ref.dtype)


def apply_rotary_emb_pallas(x, cos, sin):
    """x: (N, S, D) with rotary pairs interleaved on the last axis.
    cos/sin: (S, D//2) for the absolute positions of the S tokens."""
    N, S, D = x.shape
    D2 = D // 2
    xr = x[..., 0::2]
    xi = x[..., 1::2]
    out_r, out_i = pl.pallas_call(
        _rope_kernel,
        out_shape=(jax.ShapeDtypeStruct((N, S, D2), x.dtype),
                   jax.ShapeDtypeStruct((N, S, D2), x.dtype)),
        grid_spec=pltpu.PrefetchScalarGridSpec(
            num_scalar_prefetch=0,
            grid=(N,),
            in_specs=[
                pl.BlockSpec((1, S, D2), lambda n: (n, 0, 0)),
                pl.BlockSpec((1, S, D2), lambda n: (n, 0, 0)),
                pl.BlockSpec((S, D2), lambda n: (0, 0)),
                pl.BlockSpec((S, D2), lambda n: (0, 0)),
            ],
            out_specs=[
                pl.BlockSpec((1, S, D2), lambda n: (n, 0, 0)),
                pl.BlockSpec((1, S, D2), lambda n: (n, 0, 0)),
            ],
        ),
        compiler_params=pltpu.CompilerParams(dimension_semantics=("parallel",)),
    )(xr, xi, cos.astype(jnp.float32), sin.astype(jnp.float32))
    return jnp.stack([out_r, out_i], axis=-1).reshape(N, S, D)


# ----------------------------------------------------------------------------
# 3. Flash (online-softmax) attention kernel with GQA via the k/v index_map.
# ----------------------------------------------------------------------------
def _flash_kernel(q_ref, k_ref, v_ref, mask_ref, o_ref, m_sc, l_sc, acc_sc, *,
                  scale):
    ki = pl.program_id(2)

    @pl.when(ki == 0)
    def _():
        m_sc[...] = jnp.full(m_sc.shape, _NEG_INF, m_sc.dtype)
        l_sc[...] = jnp.zeros(l_sc.shape, l_sc.dtype)
        acc_sc[...] = jnp.zeros(acc_sc.shape, acc_sc.dtype)

    q = q_ref[0].astype(jnp.float32)          # (tq, D)
    k = k_ref[0].astype(jnp.float32)          # (tk, D)
    v = v_ref[0].astype(jnp.float32)          # (tk, D)

    s = jnp.dot(q, k.T, preferred_element_type=jnp.float32) * scale
    s = jnp.maximum(s + mask_ref[...], _NEG_INF)   # keep -inf masks finite

    m_prev = m_sc[...]
    m_new = jnp.maximum(m_prev, jnp.max(s, axis=-1, keepdims=True))
    alpha = jnp.exp(m_prev - m_new)
    p = jnp.exp(s - m_new)
    l_sc[...] = alpha * l_sc[...] + jnp.sum(p, axis=-1, keepdims=True)
    acc_sc[...] = alpha * acc_sc[...] + jnp.dot(p, v,
                                                preferred_element_type=jnp.float32)
    m_sc[...] = m_new

    @pl.when(ki == pl.num_programs(2) - 1)
    def _():
        o_ref[0] = (acc_sc[...] / l_sc[...]).astype(o_ref.dtype)


def flash_attention(q, k, v, mask, *, n_heads, n_kv_heads, scale,
                    tq=256, tk=512):
    """q: (B*n_heads, S, D); k, v: (B*n_kv_heads, L, D); mask: (S, L) additive."""
    BH, S, D = q.shape
    _, L, _ = k.shape
    n_rep = n_heads // n_kv_heads
    mask = mask.astype(jnp.float32)

    tq = S if S < tq else tq
    tk = L if L < tk else tk
    Sp, Lp = _round_up(S, tq), _round_up(L, tk)
    if Lp != L:
        k = jnp.pad(k, ((0, 0), (0, Lp - L), (0, 0)))
        v = jnp.pad(v, ((0, 0), (0, Lp - L), (0, 0)))
        mask = jnp.pad(mask, ((0, 0), (0, Lp - L)), constant_values=_NEG_INF)
    if Sp != S:
        q = jnp.pad(q, ((0, 0), (0, Sp - S), (0, 0)))
        mask = jnp.pad(mask, ((0, Sp - S), (0, 0)))

    def q_map(bh, qi, ki):
        return (bh, qi, 0)

    def kv_map(bh, qi, ki):
        b = bh // n_heads
        h = bh % n_heads
        return (b * n_kv_heads + h // n_rep, ki, 0)

    def mask_map(bh, qi, ki):
        return (qi, ki)

    out = pl.pallas_call(
        functools.partial(_flash_kernel, scale=scale),
        out_shape=jax.ShapeDtypeStruct((BH, Sp, D), q.dtype),
        grid_spec=pltpu.PrefetchScalarGridSpec(
            num_scalar_prefetch=0,
            grid=(BH, Sp // tq, Lp // tk),
            in_specs=[
                pl.BlockSpec((1, tq, D), q_map),
                pl.BlockSpec((1, tk, D), kv_map),
                pl.BlockSpec((1, tk, D), kv_map),
                pl.BlockSpec((tq, tk), mask_map),
            ],
            out_specs=pl.BlockSpec((1, tq, D), q_map),
            scratch_shapes=[
                pltpu.VMEM((tq, 1), jnp.float32),
                pltpu.VMEM((tq, 1), jnp.float32),
                pltpu.VMEM((tq, D), jnp.float32),
            ],
        ),
        compiler_params=pltpu.CompilerParams(
            dimension_semantics=("parallel", "parallel", "arbitrary")),
    )(q, k, v, mask)
    if Sp != S:
        out = out[:, :S, :]
    return out


# ----------------------------------------------------------------------------
# Attention.forward (model-parallel world size == 1)
# ----------------------------------------------------------------------------
def attention_forward(x, start_pos, cos, sin, mask, wq, wk, wv, wo,
                      cache_k, cache_v, *, n_heads, n_kv_heads):
    B, S, dim = x.shape
    head_dim = dim // n_heads

    x2d = x.reshape(B * S, dim)
    xq = matmul(x2d, wq.T).reshape(B, S, n_heads, head_dim)
    xk = matmul(x2d, wk.T).reshape(B, S, n_kv_heads, head_dim)
    xv = matmul(x2d, wv.T).reshape(B, S, n_kv_heads, head_dim)

    def to_bh(t, nh):
        return t.transpose(0, 2, 1, 3).reshape(B * nh, S, head_dim)

    def from_bh(t, nh):
        return t.reshape(B, nh, S, head_dim).transpose(0, 2, 1, 3)

    q_bh = apply_rotary_emb_pallas(to_bh(xq, n_heads), cos, sin)      # (B*H, S, D)
    k_rot = from_bh(apply_rotary_emb_pallas(to_bh(xk, n_kv_heads), cos, sin),
                    n_kv_heads)                                       # (B, S, Hkv, D)

    # KV-cache update at [start_pos : start_pos + S].
    # TODO(synk): do the cache writeback in-place with a Pallas kernel using
    # input_output_aliases instead of lax.dynamic_update_slice.
    cache_k = jax.lax.dynamic_update_slice(cache_k, k_rot.astype(cache_k.dtype),
                                           (0, start_pos, 0, 0))
    cache_v = jax.lax.dynamic_update_slice(cache_v, xv.astype(cache_v.dtype),
                                           (0, start_pos, 0, 0))

    L = start_pos + S
    keys = cache_k[:B, :L]          # (B, L, n_kv_heads, head_dim)
    values = cache_v[:B, :L]
    k_bh = keys.transpose(0, 2, 1, 3).reshape(B * n_kv_heads, L, head_dim)
    v_bh = values.transpose(0, 2, 1, 3).reshape(B * n_kv_heads, L, head_dim)

    if mask is None:
        mask = jnp.zeros((S, L), dtype=jnp.float32)

    o_bh = flash_attention(q_bh, k_bh, v_bh, mask,
                           n_heads=n_heads, n_kv_heads=n_kv_heads,
                           scale=1.0 / math.sqrt(head_dim))
    out = o_bh.reshape(B, n_heads, S, head_dim).transpose(0, 2, 1, 3)
    out = out.reshape(B * S, n_heads * head_dim)
    out = matmul(out, wo.T).reshape(B, S, dim)
    return out, cache_k, cache_v


# ----------------------------------------------------------------------------
# Pure-JAX reference (mirrors the PyTorch module line by line).
# ----------------------------------------------------------------------------
def reference_attention(x, start_pos, cos, sin, mask, wq, wk, wv, wo,
                        cache_k, cache_v, *, n_heads, n_kv_heads):
    B, S, dim = x.shape
    head_dim = dim // n_heads
    n_rep = n_heads // n_kv_heads

    xq = (x.reshape(B * S, dim) @ wq.T).reshape(B, S, n_heads, head_dim)
    xk = (x.reshape(B * S, dim) @ wk.T).reshape(B, S, n_kv_heads, head_dim)
    xv = (x.reshape(B * S, dim) @ wv.T).reshape(B, S, n_kv_heads, head_dim)

    def rope(t):
        tf = t.astype(jnp.float32).reshape(*t.shape[:-1], -1, 2)
        re, im = tf[..., 0], tf[..., 1]
        c = cos[None, :, None, :]
        s = sin[None, :, None, :]
        out = jnp.stack([re * c - im * s, re * s + im * c], axis=-1)
        return out.reshape(t.shape).astype(t.dtype)

    xq, xk = rope(xq), rope(xk)

    cache_k = jax.lax.dynamic_update_slice(cache_k, xk.astype(cache_k.dtype),
                                           (0, start_pos, 0, 0))
    cache_v = jax.lax.dynamic_update_slice(cache_v, xv.astype(cache_v.dtype),
                                           (0, start_pos, 0, 0))
    L = start_pos + S
    keys = jnp.repeat(cache_k[:B, :L], n_rep, axis=2)
    values = jnp.repeat(cache_v[:B, :L], n_rep, axis=2)

    q_t = xq.transpose(0, 2, 1, 3)
    k_t = keys.transpose(0, 2, 1, 3)
    v_t = values.transpose(0, 2, 1, 3)
    scores = jnp.einsum("bhqd,bhkd->bhqk", q_t, k_t) / math.sqrt(head_dim)
    if mask is not None:
        scores = scores + mask
    probs = jax.nn.softmax(scores.astype(jnp.float32), axis=-1).astype(q_t.dtype)
    out = jnp.einsum("bhqk,bhkd->bhqd", probs, v_t)
    out = out.transpose(0, 2, 1, 3).reshape(B, S, -1)
    return out @ wo.T


if __name__ == "__main__":
    # Small Llama-style config (GQA: n_heads=4, n_kv_heads=2 -> n_rep=2).
    dim, n_heads, n_kv_heads = 128, 4, 2
    head_dim = dim // n_heads                 # 32
    max_batch_size, max_seq_len = 2, 16
    rope_theta = 500000.0
    bsz, seqlen, start_pos = 2, 8, 4          # 4 tokens already cached

    key = jax.random.PRNGKey(0)
    ks = jax.random.split(key, 7)
    x = jax.random.normal(ks[0], (bsz, seqlen, dim), dtype=jnp.float32)
    wscale = 0.05
    wq = wscale * jax.random.normal(ks[1], (n_heads * head_dim, dim), jnp.float32)
    wk = wscale * jax.random.normal(ks[2], (n_kv_heads * head_dim, dim), jnp.float32)
    wv = wscale * jax.random.normal(ks[3], (n_kv_heads * head_dim, dim), jnp.float32)
    wo = wscale * jax.random.normal(ks[4], (dim, n_heads * head_dim), jnp.float32)
    cache_k = 0.1 * jax.random.normal(
        ks[5], (max_batch_size, max_seq_len, n_kv_heads, head_dim), jnp.float32)
    cache_v = 0.1 * jax.random.normal(
        ks[6], (max_batch_size, max_seq_len, n_kv_heads, head_dim), jnp.float32)

    # Rotary cos/sin for absolute positions [start_pos, start_pos + seqlen).
    inv_freq = 1.0 / (rope_theta ** (jnp.arange(0, head_dim, 2, dtype=jnp.float32)
                                     / head_dim))
    t = jnp.arange(start_pos, start_pos + seqlen, dtype=jnp.float32)
    angles = jnp.outer(t, inv_freq)           # (seqlen, head_dim//2)
    cos, sin = jnp.cos(angles), jnp.sin(angles)

    # Llama-style additive mask: cached positions fully visible, causal over new chunk.
    causal = jnp.triu(jnp.full((seqlen, seqlen), float("-inf"), jnp.float32), k=1)
    mask = jnp.concatenate([jnp.zeros((seqlen, start_pos), jnp.float32), causal],
                           axis=1)            # (seqlen, start_pos + seqlen)

    out, _, _ = attention_forward(
        x, start_pos, cos, sin, mask, wq, wk, wv, wo, cache_k, cache_v,
        n_heads=n_heads, n_kv_heads=n_kv_heads)
    out = jax.block_until_ready(out)

    ref = reference_attention(
        x, start_pos, cos, sin, mask, wq, wk, wv, wo, cache_k, cache_v,
        n_heads=n_heads, n_kv_heads=n_kv_heads)

    assert out.shape == (bsz, seqlen, dim)
    max_err = float(jnp.max(jnp.abs(out - ref)))
    assert jnp.allclose(out, ref, atol=2e-2, rtol=2e-2), f"max_err={max_err}"

    print("KERNEL_OK")
</pallas_src>

<mosaic_0001>
module attributes {stable_mosaic.version = 11 : i64} {
  func.func @_matmul_kernel(%arg0: i32, %arg1: i32, %arg2: i32, %arg3: memref<16x128xf32, #tpu.memory_space<vmem>>, %arg4: memref<128x128xf32, #tpu.memory_space<vmem>>, %arg5: memref<16x128xf32, #tpu.memory_space<vmem>>, %arg6: memref<16x128xf32, #tpu.memory_space<vmem>>) attributes {dimension_semantics = [#tpu.dimension_semantics<parallel>, #tpu.dimension_semantics<parallel>, #tpu.dimension_semantics<arbitrary>], iteration_bounds = array<i64: 1, 1, 1>, scalar_prefetch = 0 : i64, scratch_operands = 1 : i64, tpu.core_type = #tpu.core_type<tc>, window_params = [{transform_indices = @transform_0, window_bounds = array<i64: 16, 128>}, {transform_indices = @transform_1, window_bounds = array<i64: 128, 128>}, {transform_indices = @transform_2, window_bounds = array<i64: 16, 128>}]} {
    %c0_i32 = arith.constant 0 : i32
    %0 = arith.cmpi eq, %arg2, %c0_i32 : i32
    %1 = arith.extui %0 : i1 to i32
    %c0_i32_0 = arith.constant 0 : i32
    %2 = arith.cmpi ne, %1, %c0_i32_0 : i32
    scf.if %2 {
      %cst_10 = arith.constant 0.000000e+00 : f32
      %12 = vector.broadcast %cst_10 : f32 to vector<16x128xf32>
      %c0_11 = arith.constant 0 : index
      %c0_12 = arith.constant 0 : index
      %13 = vector.load %arg6[%c0_11, %c0_12] : memref<16x128xf32, #tpu.memory_space<vmem>>, vector<16x128xf32>
      tpu.vector_store %arg6[%c0_11, %c0_12], %12 {strides = array<i32>} : memref<16x128xf32, #tpu.memory_space<vmem>>, vector<16x128xf32>,
    } else {
    }
    %c0 = arith.constant 0 : index
    %c0_1 = arith.constant 0 : index
    %3 = vector.load %arg6[%c0, %c0_1] : memref<16x128xf32, #tpu.memory_space<vmem>>, vector<16x128xf32>
    %c0_2 = arith.constant 0 : index
    %c0_3 = arith.constant 0 : index
    %4 = vector.load %arg3[%c0_2, %c0_3] : memref<16x128xf32, #tpu.memory_space<vmem>>, vector<16x128xf32>
    %c0_4 = arith.constant 0 : index
    %c0_5 = arith.constant 0 : index
    %5 = vector.load %arg4[%c0_4, %c0_5] : memref<128x128xf32, #tpu.memory_space<vmem>>, vector<128x128xf32>
    %cst = arith.constant dense<0.000000e+00> : vector<16x128xf32>
    %6 = tpu.matmul %4, %5, %cst {dimension_numbers = #tpu.dot_dimension_numbers<[1], [0], [0], [1], [0, 0, 1, 1], [], []>} : vector<16x128xf32>, vector<128x128xf32>, vector<16x128xf32> -> vector<16x128xf32>
    %7 = arith.addf %3, %6 : vector<16x128xf32>
    %c0_6 = arith.constant 0 : index
    %c0_7 = arith.constant 0 : index
    %8 = vector.load %arg6[%c0_6, %c0_7] : memref<16x128xf32, #tpu.memory_space<vmem>>, vector<16x128xf32>
    tpu.vector_store %arg6[%c0_6, %c0_7], %7 {strides = array<i32>} : memref<16x128xf32, #tpu.memory_space<vmem>>, vector<16x128xf32>,
    %c0_i32_8 = arith.constant 0 : i32
    %9 = arith.cmpi eq, %arg2, %c0_i32_8 : i32
    %10 = arith.extui %9 : i1 to i32
    %c0_i32_9 = arith.constant 0 : i32
    %11 = arith.cmpi ne, %10, %c0_i32_9 : i32
    scf.if %11 {
      %c0_10 = arith.constant 0 : index
      %c0_11 = arith.constant 0 : index
      %12 = vector.load %arg6[%c0_10, %c0_11] : memref<16x128xf32, #tpu.memory_space<vmem>>, vector<16x128xf32>
      %c0_12 = arith.constant 0 : index
      %c0_13 = arith.constant 0 : index
      %13 = vector.load %arg5[%c0_12, %c0_13] : memref<16x128xf32, #tpu.memory_space<vmem>>, vector<16x128xf32>
      tpu.vector_store %arg5[%c0_12, %c0_13], %12 {strides = array<i32>} : memref<16x128xf32, #tpu.memory_space<vmem>>, vector<16x128xf32>,
    } else {
    }
    return
  }
  func.func @transform_0(%arg0: i32, %arg1: i32, %arg2: i32) -> (i32, i32) {
    %c0_i32 = arith.constant 0 : i32
    return %arg0, %arg2 : i32, i32
  }
  func.func @transform_1(%arg0: i32, %arg1: i32, %arg2: i32) -> (i32, i32) {
    %c0_i32 = arith.constant 0 : i32
    return %arg2, %arg1 : i32, i32
  }
  func.func @transform_2(%arg0: i32, %arg1: i32, %arg2: i32) -> (i32, i32) {
    %c0_i32 = arith.constant 0 : i32
    return %arg0, %arg1 : i32, i32
  }
}

</mosaic_0001>

<bundles_post_ra>
// kernel: tpu_custom_call.1
= control target key start
LH: loop header
LB: loop body
LE: loop exit
PB: predicated region body
PF: predicated region fallthrough
CT: control target
= control target key end

     0   :  { %7 = vsyncpa [#allocation4], 0  ;;  %s332_s0 = inlined_call_operand.hbm [shape: f32[16,128], index: 0, kind: input, shape index: {}]   ;;  %s333_s1 = inlined_call_operand.hbm [shape: f32[128,128], index: 1, kind: input, shape index: {}]   ;;  %s334_s2 = inlined_call_operand.hbm [shape: f32[16,128], index: 2, kind: output, shape index: {}]  }
   0x1   :  { %8 = vsyncpa [#allocation7], 0 }
   0x2   :  { %9 = vsyncpa [#allocation5], 0  ;;  %s294_s9 = smov [#allocation3]  }
   0x3   :  { %s15_s10 = sshll.u32 %s294_s9, 4  ;;  %s16_s10 = int_to_ptr.vmem [resolvable:$true] %s15_s10 }
   0x4   :  { %s236_s11 = scalar_lea.vmem %s16_s10, 256  ;;  %p241_p1 = scmp.lt.s32.totalorder %s16_s10, %s16_s10 }
   0x5   :  { %p237_p0 = scmp.ne.s32.totalorder %s16_s10, %s236_s11  ;;  %p242_p2 = scmp.lt.s32.totalorder %s236_s11, %s236_s11 }
   0x7   :  { %p243_p3 = por %p242_p2, %p241_p1 }
   0x9   :  { %p244_p4 = pnand %p243_p3, %p237_p0 }
   0xb   :  { %247 = shalt.err (!%p244_p4)
}
   0xc   :  { %s295_s12 = smov 128   ;;  %s296_s13 = smov 8  }
   0xd   :  { %21 = dma.hbm_to_vmem [thread:$0]  %s332_s0, 256, %s16_s10, [#allocation4], %s295_s12, %s295_s12, %s296_s13  }
   0xe   :  { %s297_s16 = smov [#allocation6]  }
   0xf   :  { %s27_s17 = sshll.u32 %s297_s16, 4  ;;  %s28_s17 = int_to_ptr.vmem [resolvable:$true] %s27_s17 }
  0x10   :  { %s256_s18 = scalar_lea.vmem %s28_s17, 2048  ;;  %p261_p6 = scmp.lt.s32.totalorder %s28_s17, %s28_s17 }
  0x11   :  { %p257_p5 = scmp.ne.s32.totalorder %s28_s17, %s256_s18  ;;  %p262_p7 = scmp.lt.s32.totalorder %s256_s18, %s256_s18 }
  0x13   :  { %p263_p8 = por %p262_p7, %p261_p6 }
  0x15   :  { %p264_p9 = pnand %p263_p8, %p257_p5 }
  0x17   :  { %267 = shalt.err (!%p264_p9)
}
  0x18   :  { %33 = dma.hbm_to_vmem [thread:$0]  %s333_s1, 2048, %s28_s17, [#allocation7], %s295_s12, %s295_s12, %s296_s13  }
  0x19   :  { %288 = dma.done.wait [#allocation4], 256  }
  0x1a   :  { %289 = vsyncadd [#allocation4], 4294967040 }
  0x1b   :  { %290 = dma.done.wait [#allocation7], 2048  }
  0x1c   :  { %291 = vsyncadd [#allocation7], 4294965248  ;;  %v65_v0 = vld [vmem:[#allocation6 + $0x78] sm:$0xff]  ;;  %v64_v1 = vld [vmem:[#allocation6 + $0x70] sm:$0xff]  ;;  %s298_s0 = smov [#allocation8]  }
  0x1d   :  { %188 = vmatprep.subr.mxu0 %v65_v0  ;;  %v63_v2 = vld [vmem:[#allocation6 + $0x68] sm:$0xff]  ;;  %v62_v3 = vld [vmem:[#allocation6 + $0x60] sm:$0xff]  ;;  %v48_v4 = vld [vmem:[#allocation3] sm:$0xff]  ;;  %s157_s1 = sshll.u32 %s298_s0, 4  ;;  %s158_s1 = int_to_ptr.vmem [resolvable:$true] %s157_s1 }
  0x1e   :  { %189 = vmatpush3.msra.mxu0 %v65_v0  ;;  %v61_v5 = vld [vmem:[#allocation6 + $0x58] sm:$0xff]  ;;  %220 = vmatprep.mubr.f32.mxu0 %v48_v4  ;;  %v60_v6 = vld [vmem:[#allocation6 + $0x50] sm:$0xff]  ;;  %v59_v7 = vld [vmem:[#allocation6 + $0x48] sm:$0xff]  ;;  %s268_s21 = scalar_lea.vmem %s158_s1, 256  ;;  %p273_p11 = scmp.lt.s32.totalorder %s158_s1, %s158_s1 }
  0x1f   :  { %190 = vmatprep.subr.mxu0 %v64_v1  ;;  %v58_v8 = vld [vmem:[#allocation6 + $0x40] sm:$0xff]  ;;  %v57_v9 = vld [vmem:[#allocation6 + $0x38] sm:$0xff]  ;;  %v56_v10 = vld [vmem:[#allocation6 + $0x30] sm:$0xff]  ;;  %p269_p10 = scmp.ne.s32.totalorder %s158_s1, %s268_s21  ;;  %p274_p12 = scmp.lt.s32.totalorder %s268_s21, %s268_s21 }
  0x20   :  { %191 = vmatpush3.msra.mxu0 %v64_v1  ;;  %v55_v11 = vld [vmem:[#allocation6 + $0x28] sm:$0xff]  ;;  %v54_v12 = vld [vmem:[#allocation6 + $0x20] sm:$0xff]  ;;  %v53_v13 = vld [vmem:[#allocation6 + $0x18] sm:$0xff] }
  0x21   :  { %192 = vmatprep.subr.mxu0 %v63_v2  ;;  %v52_v14 = vld [vmem:[#allocation6 + $0x10] sm:$0xff]  ;;  %v51_v15 = vld [vmem:[#allocation6 + $0x8] sm:$0xff]  ;;  %v50_v16 = vld [vmem:[#allocation6] sm:$0xff]  ;;  %p275_p13 = por %p274_p12, %p273_p11 }
  0x22   :  { %193 = vmatpush3.msra.mxu0 %v63_v2  ;;  %v49_v17 = vld [vmem:[#allocation3 + $0x8] sm:$0xff] }
  0x23   :  { %194 = vmatprep.subr.mxu0 %v62_v3  ;;  %p276_p0 = pnand %p275_p13, %p269_p10 }
  0x24   :  { %195 = vmatpush3.msra.mxu0 %v62_v3 }
  0x25   :  { %196 = vmatprep.subr.mxu0 %v61_v5 }
  0x26   :  { %197 = vmatpush3.msra.mxu0 %v61_v5 }
  0x27   :  { %198 = vmatprep.subr.mxu0 %v60_v6 }
  0x28   :  { %199 = vmatpush3.msra.mxu0 %v60_v6 }
  0x29   :  { %200 = vmatprep.subr.mxu0 %v59_v7 }
  0x2a   :  { %201 = vmatpush3.msra.mxu0 %v59_v7 }
  0x2b   :  { %202 = vmatprep.subr.mxu0 %v58_v8 }
  0x2c   :  { %203 = vmatpush3.msra.mxu0 %v58_v8 }
  0x2d   :  { %204 = vmatprep.subr.mxu0 %v57_v9 }
  0x2e   :  { %205 = vmatpush3.msra.mxu0 %v57_v9 }
  0x2f   :  { %206 = vmatprep.subr.mxu0 %v56_v10 }
  0x30   :  { %207 = vmatpush3.msra.mxu0 %v56_v10 }
  0x31   :  { %208 = vmatprep.subr.mxu0 %v55_v11 }
  0x32   :  { %209 = vmatpush3.msra.mxu0 %v55_v11 }
  0x33   :  { %210 = vmatprep.subr.mxu0 %v54_v12 }
  0x34   :  { %211 = vmatpush3.msra.mxu0 %v54_v12 }
  0x35   :  { %212 = vmatprep.subr.mxu0 %v53_v13 }
  0x36   :  { %213 = vmatpush3.msra.mxu0 %v53_v13 }
  0x37   :  { %214 = vmatprep.subr.mxu0 %v52_v14 }
  0x38   :  { %215 = vmatpush3.msra.mxu0 %v52_v14 }
  0x39   :  { %216 = vmatprep.subr.mxu0 %v51_v15 }
  0x3a   :  { %217 = vmatpush3.msra.mxu0 %v51_v15 }
  0x3b   :  { %218 = vmatprep.subr.mxu0 %v50_v16 }
  0x3c   :  { %219 = vmatpush3.msra.mxu0 %v50_v16 }
  0x3d   :  { %221 = vmatmul.mubr.f32.vlgmr.msra.gmra.mxu0 %v49_v17 }
  0xfd   :  { %v222_v18 = vpop.f32.mrf.mxu0 }
  0xfe   :  { %151 = vst [vmem:[#allocation8 + $0x8] sm:$0xff] %v222_v18 }
  0xff   :  { %v132_v19 = vpop.f32.mrf.mxu0 }
 0x100   :  { %150 = vst [vmem:[#allocation8] sm:$0xff] %v132_v19 }
 0x101   :  { %279 = shalt.err (!%p276_p0)
}
 0x102   :  { %163 = dma.vmem_to_hbm [thread:$0]  %s158_s1, 256, %s334_s2, [#allocation5], %s295_s12, %s295_s12, %s296_s13  }
 0x103   :  { %292 = dma.done.wait [#allocation5], 256  }
 0x104   :  { %293 = vsyncadd [#allocation5], 4294967040 }
 0x105   :  { %167 = vsyncpa [#allocation4], 1 }
 0x106   :  { %168 = vsyncpa [#allocation7], 1 }
 0x107   :  { %169 = vsyncpa [#allocation5], 1 }

</bundles_post_ra>
